<compile_context>
chip_gen: v6e
topology: v6e:2x2x1
jax: 0.10.0
libtpu: 0.0.40
codegen_flags: <defaults>
</compile_context>

<pallas_src>
import functools

import jax
import jax.numpy as jnp
from jax.experimental import pallas as pl
from jax.experimental.pallas import tpu as pltpu

EPS = 1e-5     # torch BatchNorm2d default
LANE = 128     # TPU lane width; all matmul N / K dims are padded to a multiple of this


def _round_up(v, m):
    return (v + m - 1) // m * m


def _pick_tile(dim, candidates):
    for c in candidates:
        if c <= dim and dim % c == 0:
            return c
    return dim


def _vmem_spec():
    return pl.BlockSpec(memory_space=pltpu.MemorySpace.VMEM)


# --------------------------------------------------------------------------
# Pallas kernels
# --------------------------------------------------------------------------
def _fused_matmul_kernel(do_relu, has_res, *refs):
    """Tiled y = (x @ w_folded) + bias [+ residual] [relu]; f32 accumulation."""
    if has_res:
        x_ref, w_ref, b_ref, r_ref, o_ref, acc_ref = refs
    else:
        x_ref, w_ref, b_ref, o_ref, acc_ref = refs
    kk = pl.program_id(2)

    @pl.when(kk == 0)
    def _():
        acc_ref[...] = jnp.zeros_like(acc_ref)

    acc_ref[...] += jnp.dot(x_ref[...], w_ref[...],
                            preferred_element_type=jnp.float32)

    @pl.when(kk == pl.num_programs(2) - 1)
    def _():
        y = acc_ref[...] + b_ref[...]
        if has_res:
            y = y + r_ref[...].astype(jnp.float32)
        if do_relu:
            y = jnp.maximum(y, 0.0)
        o_ref[...] = y.astype(o_ref.dtype)


def fused_matmul(x, w, bias, residual=None, relu=True, out_dtype=jnp.bfloat16):
    """x: (M, K) bf16, w: (K, N) bf16 (BN-folded), bias: (1, N) f32, residual: (M, N)."""
    M, K = x.shape
    Kw, N = w.shape
    assert K == Kw and K % LANE == 0 and N % LANE == 0, (x.shape, w.shape)

    tm = _pick_tile(M, (256, 128, 64, 32, 16, 8))
    tn = 128                                  # lane-dense output tile (v5e MXU width)
    tk = _pick_tile(K, (512, 384, 256, 128))
    grid = (M // tm, N // tn, K // tk)

    in_specs = [
        pl.BlockSpec((tm, tk), lambda i, j, kk: (i, kk)),
        pl.BlockSpec((tk, tn), lambda i, j, kk: (kk, j)),
        pl.BlockSpec((1, tn), lambda i, j, kk: (0, j)),
    ]
    args = [x, w, bias]
    has_res = residual is not None
    if has_res:
        in_specs.append(pl.BlockSpec((tm, tn), lambda i, j, kk: (i, j)))
        args.append(residual)

    kernel = functools.partial(_fused_matmul_kernel, relu, has_res)
    return pl.pallas_call(
        kernel,
        out_shape=jax.ShapeDtypeStruct((M, N), out_dtype),
        grid_spec=pltpu.PrefetchScalarGridSpec(
            num_scalar_prefetch=0,
            grid=grid,
            in_specs=in_specs,
            out_specs=pl.BlockSpec((tm, tn), lambda i, j, kk: (i, j)),
            scratch_shapes=[pltpu.VMEM((tm, tn), jnp.float32)],
        ),
        compiler_params=pltpu.CompilerParams(
            dimension_semantics=("parallel", "parallel", "arbitrary"),
            vmem_limit_bytes=64 * 1024 * 1024,   # fits v7x's 64 MiB VMEM per TC
        ),
    )(*args)


def _maxpool_kernel(Ho, Wo, x_ref, o_ref):
    """2x2/2 max pool on NHWC; single read of x, only static indexing (safe lowering)."""
    for i in range(Ho):
        row = jnp.maximum(x_ref[:, 2 * i, :, :], x_ref[:, 2 * i + 1, :, :])  # (N, W, C)
        for j in range(Wo):
            o_ref[:, i, j, :] = jnp.maximum(row[:, 2 * j, :], row[:, 2 * j + 1, :])


def maxpool2x2(x):
    """MaxPool2d(kernel=2, stride=2) on NHWC, fully inside one Pallas kernel."""
    Nb, H, W, C = x.shape
    Ho, Wo = H // 2, W // 2
    kernel = functools.partial(_maxpool_kernel, Ho, Wo)
    return pl.pallas_call(
        kernel,
        out_shape=jax.ShapeDtypeStruct((Nb, Ho, Wo, C), x.dtype),
        in_specs=[_vmem_spec()],
        out_specs=_vmem_spec(),
    )(x)


def _avgpool_kernel(x_ref, o_ref):
    o_ref[...] = jnp.mean(x_ref[...].astype(jnp.float32), axis=1)


def global_avgpool(x):
    """AdaptiveAvgPool2d((1,1)) + flatten: (N, H, W, C) -> (N, C) in f32."""
    Nb, H, W, C = x.shape
    xr = x.reshape(Nb, H * W, C)
    return pl.pallas_call(
        _avgpool_kernel,
        out_shape=jax.ShapeDtypeStruct((Nb, C), jnp.float32),
        in_specs=[_vmem_spec()],
        out_specs=_vmem_spec(),
    )(xr)


# --------------------------------------------------------------------------
# Plain-JAX glue: im2col (zero-padded K) — see TODO(synk) about fusing this.
# --------------------------------------------------------------------------
def im2col(x, k, stride, pad, k_pad):
    """x: (N, H, W, C) -> bf16 patches (N*Ho*Wo, k_pad), plus (Ho, Wo)."""
    N, H, W, C = x.shape
    xp = jnp.pad(x, ((0, 0), (pad, pad), (pad, pad), (0, 0)))
    Ho = (H + 2 * pad - k) // stride + 1
    Wo = (W + 2 * pad - k) // stride + 1
    cols = []
    for i in range(k):
        for j in range(k):
            cols.append(xp[:, i:i + stride * Ho:stride, j:j + stride * Wo:stride, :])
    patches = jnp.stack(cols, axis=3).reshape(N * Ho * Wo, k * k * C)
    if k_pad > k * k * C:
        patches = jnp.pad(patches, ((0, 0), (0, k_pad - k * k * C)))
    return patches.astype(jnp.bfloat16), Ho, Wo


def conv_bn_act(x, prep, k, stride, pad, relu=True, residual=None):
    """Conv2d(k, stride, pad) + BN(eval, folded) [+ residual] [+ ReLU] via Pallas."""
    Nb = x.shape[0]
    k_pad, n_pad = prep["w"].shape
    patches, Ho, Wo = im2col(x, k, stride, pad, k_pad)
    res2d = residual.reshape(Nb * Ho * Wo, n_pad) if residual is not None else None
    out = fused_matmul(patches, prep["w"], prep["bias"],
                       residual=res2d, relu=relu, out_dtype=jnp.bfloat16)
    return out.reshape(Nb, Ho, Wo, n_pad)


# --------------------------------------------------------------------------
# Parameter initialization (raw, f32) and offline weight preparation
# --------------------------------------------------------------------------
def init_conv_bn(key, c_in, c_out, k):
    k1, k2, k3, k4, k5, k6 = jax.random.split(key, 6)
    return dict(
        w=0.1 * jax.random.normal(k1, (k, k, c_in, c_out), jnp.float32),   # HWIO
        b=0.05 * jax.random.normal(k2, (c_out,), jnp.float32),
        gamma=1.0 + 0.1 * jax.random.normal(k3, (c_out,), jnp.float32),
        beta=0.1 * jax.random.normal(k4, (c_out,), jnp.float32),
        mean=0.05 * jax.random.normal(k5, (c_out,), jnp.float32),
        var=1.0 + 0.1 * jax.random.uniform(k6, (c_out,), jnp.float32),
    )


def init_params(key, block_sizes, res):
    n_keys = 1 + 3 * len(block_sizes) + 2
    keys = jax.random.split(key, n_keys)
    params = {"stem": init_conv_bn(keys[0], 3, 64, 5), "blocks": []}
    ki = 1
    for (c_in, c_out, stride) in block_sizes:
        blk = {
            "conv1": init_conv_bn(keys[ki], c_in, c_out, 3),
            "conv2": init_conv_bn(keys[ki + 1], c_out, c_out, 3),
        }
        if res and stride != 1:
            blk["down"] = init_conv_bn(keys[ki + 2], c_in, c_out, 1)
        params["blocks"].append(blk)
        ki += 3
    c_last = block_sizes[-1][1]
    params["fc_w"] = 0.1 * jax.random.normal(keys[-2], (c_last, 200), jnp.float32)
    params["fc_b"] = 0.05 * jax.random.normal(keys[-1], (200,), jnp.float32)
    return params


def prep_conv_bn(p, c_in_act):
    """Fold BN(eval)+bias into bf16 (K_pad, N_pad) weights and f32 (1, N_pad) bias."""
    k, _, c_in, c_out = p["w"].shape
    scale = p["gamma"] * jax.lax.rsqrt(p["var"] + EPS)
    bias = p["beta"] - p["mean"] * scale + p["b"] * scale
    w = p["w"] * scale[None, None, None, :]                 # BN scale folded offline
    if c_in_act > c_in:                                     # match channel-padded acts
        w = jnp.pad(w, ((0, 0), (0, 0), (0, c_in_act - c_in), (0, 0)))
    n_pad = _round_up(c_out, LANE)                          # lane-dense output channels
    if n_pad > c_out:
        w = jnp.pad(w, ((0, 0), (0, 0), (0, 0), (0, n_pad - c_out)))
        bias = jnp.pad(bias, (0, n_pad - c_out))
    k_real = k * k * c_in_act
    k_pad = _round_up(k_real, LANE)
    w2d = w.reshape(k_real, n_pad)
    if k_pad > k_real:
        w2d = jnp.pad(w2d, ((0, k_pad - k_real), (0, 0)))
    return dict(w=w2d.astype(jnp.bfloat16),
                bias=bias.reshape(1, n_pad).astype(jnp.float32))


def prep_fc(w, b):
    c_in, n = w.shape
    c_in_pad = _round_up(c_in, LANE)
    n_pad = _round_up(n, LANE)
    w_p = jnp.pad(w, ((0, c_in_pad - c_in), (0, n_pad - n)))
    b_p = jnp.pad(b, (0, n_pad - n))
    return dict(w=w_p.astype(jnp.bfloat16),
                bias=b_p.reshape(1, n_pad).astype(jnp.float32))


def prepare_params(params, block_sizes, res):
    pp = {"stem": prep_conv_bn(params["stem"], c_in_act=3), "blocks": []}
    for blk, (c_in, c_out, stride) in zip(params["blocks"], block_sizes):
        b = {
            "conv1": prep_conv_bn(blk["conv1"], c_in_act=_round_up(c_in, LANE)),
            "conv2": prep_conv_bn(blk["conv2"], c_in_act=_round_up(c_out, LANE)),
        }
        if res and stride != 1:
            b["down"] = prep_conv_bn(blk["down"], c_in_act=_round_up(c_in, LANE))
        pp["blocks"].append(b)
    pp["fc"] = prep_fc(params["fc_w"], params["fc_b"])
    return pp


# --------------------------------------------------------------------------
# Forward pass (mirrors CNN.forward in eval mode; dropout = identity)
# --------------------------------------------------------------------------
def cnn_forward(pp, x_nchw, block_sizes, res, num_classes=200):
    x = jnp.transpose(x_nchw, (0, 2, 3, 1)).astype(jnp.bfloat16)   # NCHW -> NHWC bf16

    # stem: Conv2d(3, 64, 5, 1, 2) + BN + ReLU + MaxPool2d(2, 2)
    x = conv_bn_act(x, pp["stem"], 5, 1, 2, relu=True)
    x = maxpool2x2(x)

    # BasicBlocks (dropout layers are identity in eval mode)
    for blk_p, (_, _, stride) in zip(pp["blocks"], block_sizes):
        out = conv_bn_act(x, blk_p["conv1"], 3, stride, 1, relu=True)
        if res:
            if stride != 1:
                identity = conv_bn_act(x, blk_p["down"], 1, stride, 0, relu=False)
            else:
                identity = x
            x = conv_bn_act(out, blk_p["conv2"], 3, 1, 1, relu=True, residual=identity)
        else:
            x = conv_bn_act(out, blk_p["conv2"], 3, 1, 1, relu=True)

    pooled = global_avgpool(x)                                      # (N, C_pad) f32
    logits = fused_matmul(pooled.astype(jnp.bfloat16), pp["fc"]["w"], pp["fc"]["bias"],
                          relu=False, out_dtype=jnp.float32)
    return logits[:, :num_classes]


# --------------------------------------------------------------------------
# Pure-JAX f32 reference (for numerical sanity check)
# --------------------------------------------------------------------------
def ref_forward(params, x_nchw, block_sizes, res):
    x = jnp.transpose(x_nchw, (0, 2, 3, 1))

    def cb(x, p, s, pad, relu=True):
        y = jax.lax.conv_general_dilated(
            x, p["w"], (s, s), [(pad, pad), (pad, pad)],
            dimension_numbers=("NHWC", "HWIO", "NHWC"))
        scale = p["gamma"] / jnp.sqrt(p["var"] + EPS)
        y = y * scale + (p["beta"] - p["mean"] * scale + p["b"] * scale)
        return jnp.maximum(y, 0.0) if relu else y

    x = cb(x, params["stem"], 1, 2)
    N, H, W, C = x.shape
    x = jnp.max(x.reshape(N, H // 2, 2, W // 2, 2, C), axis=(2, 4))
    for p, (_, _, s) in zip(params["blocks"], block_sizes):
        out = cb(x, p["conv1"], s, 1)
        y = cb(out, p["conv2"], 1, 1, relu=False)
        if res:
            identity = cb(x, p["down"], s, 0, relu=False) if s != 1 else x
            y = y + identity
        x = jnp.maximum(y, 0.0)
    pooled = jnp.mean(x, axis=(1, 2))
    return pooled @ params["fc_w"] + params["fc_b"]


# --------------------------------------------------------------------------
if __name__ == "__main__":
    # Small config consistent with the module: stem outputs 64 channels.
    block_sizes = [(64, 32, 2), (32, 32, 1)]   # (c_in, c_out, stride)
    res = True

    key = jax.random.PRNGKey(0)
    k_params, k_x = jax.random.split(key)
    params = init_params(k_params, block_sizes, res)
    prepped = prepare_params(params, block_sizes, res)   # offline BN fold + pad + bf16

    # PyTorch conv input layout is NCHW: (batch=2, channels=3, 16, 16)
    x = jax.random.normal(k_x, (2, 3, 16, 16), jnp.float32)

    out = jax.block_until_ready(cnn_forward(prepped, x, block_sizes, res))
    assert out.shape == (2, 200), out.shape

    ref = jax.block_until_ready(ref_forward(params, x, block_sizes, res))
    max_err = float(jnp.max(jnp.abs(out - ref)))
    # bf16 operands -> slightly looser tolerance than the pure-f32 version.
    assert jnp.allclose(out, ref, rtol=5e-2, atol=2e-2), max_err

    print("KERNEL_OK")
</pallas_src>

<mosaic_0001>
module attributes {stable_mosaic.version = 11 : i64} {
  func.func @_fused_matmul_kernel(%arg0: i32, %arg1: i32, %arg2: i32, %arg3: memref<256x128xbf16, #tpu.memory_space<vmem>>, %arg4: memref<128x128xbf16, #tpu.memory_space<vmem>>, %arg5: memref<1x128xf32, #tpu.memory_space<vmem>>, %arg6: memref<256x128xbf16, #tpu.memory_space<vmem>>, %arg7: memref<256x128xf32, #tpu.memory_space<vmem>>) attributes {dimension_semantics = [#tpu.dimension_semantics<parallel>, #tpu.dimension_semantics<parallel>, #tpu.dimension_semantics<arbitrary>], iteration_bounds = array<i64: 2, 1, 1>, scalar_prefetch = 0 : i64, scratch_operands = 1 : i64, tpu.core_type = #tpu.core_type<tc>, window_params = [{transform_indices = @transform_0, window_bounds = array<i64: 256, 128>}, {transform_indices = @transform_1, window_bounds = array<i64: 128, 128>}, {transform_indices = @transform_2, window_bounds = array<i64: 1, 128>}, {transform_indices = @transform_3, window_bounds = array<i64: 256, 128>}]} {
    %c0_i32 = arith.constant 0 : i32
    %0 = arith.cmpi eq, %arg2, %c0_i32 : i32
    %1 = arith.extui %0 : i1 to i32
    %c0_i32_0 = arith.constant 0 : i32
    %2 = arith.cmpi ne, %1, %c0_i32_0 : i32
    scf.if %2 {
      %cst_10 = arith.constant 0.000000e+00 : f32
      %12 = vector.broadcast %cst_10 : f32 to vector<256x128xf32>
      %c0_11 = arith.constant 0 : index
      %c0_12 = arith.constant 0 : index
      %13 = vector.load %arg7[%c0_11, %c0_12] : memref<256x128xf32, #tpu.memory_space<vmem>>, vector<256x128xf32>
      tpu.vector_store %arg7[%c0_11, %c0_12], %12 {strides = array<i32>} : memref<256x128xf32, #tpu.memory_space<vmem>>, vector<256x128xf32>,
    } else {
    }
    %c0 = arith.constant 0 : index
    %c0_1 = arith.constant 0 : index
    %3 = vector.load %arg7[%c0, %c0_1] : memref<256x128xf32, #tpu.memory_space<vmem>>, vector<256x128xf32>
    %c0_2 = arith.constant 0 : index
    %c0_3 = arith.constant 0 : index
    %4 = vector.load %arg3[%c0_2, %c0_3] : memref<256x128xbf16, #tpu.memory_space<vmem>>, vector<256x128xbf16>
    %c0_4 = arith.constant 0 : index
    %c0_5 = arith.constant 0 : index
    %5 = vector.load %arg4[%c0_4, %c0_5] : memref<128x128xbf16, #tpu.memory_space<vmem>>, vector<128x128xbf16>
    %cst = arith.constant dense<0.000000e+00> : vector<256x128xf32>
    %6 = tpu.matmul %4, %5, %cst {dimension_numbers = #tpu.dot_dimension_numbers<[1], [0], [0], [1], [0, 0, 1, 1], [], []>} : vector<256x128xbf16>, vector<128x128xbf16>, vector<256x128xf32> -> vector<256x128xf32>
    %7 = arith.addf %3, %6 : vector<256x128xf32>
    %c0_6 = arith.constant 0 : index
    %c0_7 = arith.constant 0 : index
    %8 = vector.load %arg7[%c0_6, %c0_7] : memref<256x128xf32, #tpu.memory_space<vmem>>, vector<256x128xf32>
    tpu.vector_store %arg7[%c0_6, %c0_7], %7 {strides = array<i32>} : memref<256x128xf32, #tpu.memory_space<vmem>>, vector<256x128xf32>,
    %c0_i32_8 = arith.constant 0 : i32
    %9 = arith.cmpi eq, %arg2, %c0_i32_8 : i32
    %10 = arith.extui %9 : i1 to i32
    %c0_i32_9 = arith.constant 0 : i32
    %11 = arith.cmpi ne, %10, %c0_i32_9 : i32
    scf.if %11 {
      %c0_10 = arith.constant 0 : index
      %c0_11 = arith.constant 0 : index
      %12 = vector.load %arg7[%c0_10, %c0_11] : memref<256x128xf32, #tpu.memory_space<vmem>>, vector<256x128xf32>
      %c0_12 = arith.constant 0 : index
      %c0_13 = arith.constant 0 : index
      %13 = vector.load %arg5[%c0_12, %c0_13] : memref<1x128xf32, #tpu.memory_space<vmem>>, vector<1x128xf32>
      %14 = vector.broadcast %13 : vector<1x128xf32> to vector<256x128xf32>
      %15 = arith.addf %12, %14 : vector<256x128xf32>
      %cst_14 = arith.constant 0.000000e+00 : f32
      %16 = vector.broadcast %cst_14 : f32 to vector<256x128xf32>
      %17 = arith.maximumf %15, %16 : vector<256x128xf32>
      %18 = arith.truncf %17 : vector<256x128xf32> to vector<256x128xbf16>
      %c0_15 = arith.constant 0 : index
      %c0_16 = arith.constant 0 : index
      %19 = vector.load %arg6[%c0_15, %c0_16] : memref<256x128xbf16, #tpu.memory_space<vmem>>, vector<256x128xbf16>
      tpu.vector_store %arg6[%c0_15, %c0_16], %18 {strides = array<i32>} : memref<256x128xbf16, #tpu.memory_space<vmem>>, vector<256x128xbf16>,
    } else {
    }
    return
  }
  func.func @transform_0(%arg0: i32, %arg1: i32, %arg2: i32) -> (i32, i32) {
    %c0_i32 = arith.constant 0 : i32
    return %arg0, %arg2 : i32, i32
  }
  func.func @transform_1(%arg0: i32, %arg1: i32, %arg2: i32) -> (i32, i32) {
    %c0_i32 = arith.constant 0 : i32
    return %arg2, %arg1 : i32, i32
  }
  func.func @transform_2(%arg0: i32, %arg1: i32, %arg2: i32) -> (i32, i32) {
    %c0_i32 = arith.constant 0 : i32
    %c0_i32_0 = arith.constant 0 : i32
    return %c0_i32, %arg1 : i32, i32
  }
  func.func @transform_3(%arg0: i32, %arg1: i32, %arg2: i32) -> (i32, i32) {
    %c0_i32 = arith.constant 0 : i32
    return %arg0, %arg1 : i32, i32
  }
}

</mosaic_0001>

<bundles_post_ra>
// kernel: tpu_custom_call.1
= control target key start
LH: loop header
LB: loop body
LE: loop exit
PB: predicated region body
PF: predicated region fallthrough
CT: control target
= control target key end

     0   :  { %8 = vsyncpa [#allocation4], 0  ;;  %s1962_s0 = inlined_call_operand.hbm [shape: bf16[512,128], index: 0, kind: input, shape index: {}]   ;;  %s1963_s1 = inlined_call_operand.hbm [shape: bf16[128,128], index: 1, kind: input, shape index: {}]   ;;  %s1964_s2 = inlined_call_operand.vmem [shape: f32[1,128], index: 2, kind: input, shape index: {}]   ;;  %s1965_s3 = inlined_call_operand.hbm [shape: bf16[512,128], index: 3, kind: output, shape index: {}]  }
   0x1   :  { %10 = vsyncpa [#allocation4 + $0x1], 0 }
   0x2   :  { %11 = vsyncpa [#allocation7], 0 }
   0x3   :  { %12 = vsyncpa [#allocation5], 0 }
   0x4   :  { %14 = vsyncpa [#allocation5 + $0x1], 0  ;;  %s1697_s12 = smov 0   ;;  %s1699_s13 = smov 0  }
   0x5   :  { %s1701_s14 = smov 0   ;;  %s1703_s15 = smov 0  }
   0x6   :  { %s1705_s16 = smov 0   ;;  %s1707_s17 = smov 0  }
   0x7 LB: > { %s1137_s18 = sadd.s32 4294967295, %s1668_s17   ;;  %s1138_s19 = sadd.s32 4294967294, %s1668_s17   ;;  %s1668_s17 = sphi %s1707_s17, %s20_s17   ;;  %s1664_s16 = sphi %s1705_s16, %s1987_s16   ;;  %s1660_s15 = sphi %s1703_s15, %s1986_s15   ;;  %s1656_s14 = sphi %s1701_s14, %s1985_s14   ;;  %s1652_s13 = sphi %s1699_s13, %s1984_s13   ;;  %s1648_s12 = sphi %s1697_s12, %s1983_s12  }
   0x8   : > { %p61_p0 = scmp.ne.s32.totalorder %s1652_s13, %s1648_s12  ;;  %p1731_p1 = scmp.eq.s32.totalorder %s1137_s18, 0 }
   0x9   : > { %p1735_p2 = scmp.eq.s32.totalorder %s1137_s18, 1  ;;  %p147_p3 = scmp.eq.s32.totalorder %s1138_s19, 1 }
   0xa   : > { %p1741_p4 = por %p1731_p1, %p61_p0  ;;  %p1139_p5 = scmp.ge.s32.totalorder %s1668_s17, 1 }
   0xb   : > { %p1746_p6 = por %p147_p3, %p61_p0  ;;  %p154_p7 = scmp.lt.s32.totalorder %s1668_s17, 3 }
   0xc   : > { %s1971_s22 = scalar_select %p1741_p4, 1, 0 }
   0xd   : > { %s1972_s23 = scalar_select %p1746_p6, 1, 0 }
   0xe   : > { %p1751_p8 = pnand %p1139_p5, %p154_p7  ;;  %s1670_s25 = smov [#allocation6]  }
   0xf   : > { %s170_s26 = sshll.u32 %s1670_s25, 4  ;;  %s39_s28 = sadd.s32 1, %s1664_s16  ;;  %s171_s26 = int_to_ptr.vmem [resolvable:$true] %s170_s26 }
  0x10   : > { %p1437_p9 = pneg %p1751_p8  ;;  %s1541_s29 = scalar_lea.vmem %s171_s26, 1024 }
  0x11   : > { %p1542_p13 = scmp.ne.s32.totalorder %s171_s26, %s1541_s29  ;;  %p1549_p5 = scmp.lt.s32.totalorder %s171_s26, %s171_s26 }
  0x12   : > { %p1760_p11 = pnand %p1437_p9, %p1731_p1  ;;  %p1550_p7 = scmp.lt.s32.totalorder %s1541_s29, %s1541_s29 }
  0x14   : > { %p1532_p12 = pneg %p1760_p11  ;;  %p1551_p6 = por %p1550_p7, %p1549_p5 }
  0x16   : > { %p1544_p0 = pnand %p1542_p13, %p1532_p12 }
  0x18   : > { %p1545_p3 = pneg %p1544_p0 }
  0x1a   : > { %p1552_p4 = pnand %p1551_p6, %p1545_p3 }
  0x1c   : > { %1555 = shalt.err (!%p1552_p4)
}
  0x1d   : > { %s1967_s30 = smov 64   ;;  %s1968_s4 = smov 4  }
  0x1e   : > { %1440 = dma.hbm_to_vmem [thread:$0]  (!%p1760_p11), %s1963_s1, 1024, %s171_s26, [#allocation7], %s1967_s30, %s1967_s30, %s1968_s4  }
  0x1f   : > { %p41_p4 = scmp.ge.s32.totalorder %s39_s28, 2  ;;  %s48_s7 = sadd.s32 1, %s1656_s14 }
  0x20   : > { %p55_p6 = scmp.ne.s32.totalorder %s1656_s14, %s1652_s13  ;;  %p56_p9 = scmp.eq.s32.totalorder %s1668_s17, 0 }
  0x21   : > { %s1989_s28 = smov (%p41_p4, %s39_s28), 0  ;;  %p1450_p0 = scmp.lt.s32.totalorder %s1668_s17, 2 }
  0x22   : > { %p1781_p12 = por %p56_p9, %p55_p6  ;;  %p1787_p13 = por %p1735_p2, %p55_p6 }
  0x23   : > { %s43_s10 = ssub.s32 %s1664_s16, %s1989_s28  ;;  %s190_s11 = sand.u32 1, %s1656_s14  }
  0x24   : > { %p46_p11 = scmp.eq.s32.totalorder %s43_s10, 0  ;;  %s1143_s18 = sshll.u32 %s190_s11, 7 }
  0x25   : > { %s1212_s25 = sshll.u32 %s1664_s16, 11  ;;  %s194_s5 = scalar_lea.vmem [#allocation3], %s1143_s18 }
  0x26   : > { %s1796_s19 = scalar_select %p46_p11, %s1656_s14, %s48_s7  }
  0x27   : > { %s201_s29 = scalar_lea.hbm %s1962_s0, %s1212_s25  ;;  %s202_s6 = sshll.u32 %s194_s5, 4  ;;  %s203_s6 = int_to_ptr.vmem [resolvable:$true] %s202_s6 }
  0x28   : > { %p1804_p2 = pnand %p1450_p0, %p1781_p12  ;;  %s191_s30 = scalar_lea.sflag [#allocation4], %s190_s11 }
  0x29   : > { %s1569_s10 = scalar_lea.vmem %s203_s6, 2048  ;;  %s1673_s7 = smov [#allocation3]  }
  0x2a   : > { %p1558_p3 = pneg %p1804_p2  ;;  %p1570_p5 = scmp.ne.s32.totalorder %s203_s6, %s1569_s10 }
  0x2b   : > { %s1574_s4 = sshll.u32 %s1673_s7, 4  ;;  %s1575_s4 = int_to_ptr.vmem [resolvable:$false] %s1574_s4 }
  0x2c   : > { %p1572_p7 = pnand %p1570_p5, %p1558_p3  ;;  %s1576_s25 = scalar_lea.vmem %s1575_s4, 4096 }
  0x2d   : > { %p1577_p6 = scmp.lt.s32.totalorder %s203_s6, %s1575_s4  ;;  %p1578_p9 = scmp.lt.s32.totalorder %s1576_s25, %s1569_s10 }
  0x2e   : > { %p1573_p4 = pneg %p1572_p7 }
  0x2f   : > { %p1579_p11 = por %p1578_p9, %p1577_p6 }
  0x31   : > { %p1580_p10 = pnand %p1579_p11, %p1573_p4 }
  0x33   : > { %1583 = shalt.err (!%p1580_p10)
}
  0x34   : > { %s1978_s8 = smov 4   ;;  %s1979_s18 = smov 64  }
  0x35   : > { %1444 = dma.hbm_to_vmem [thread:$0]  (!%p1804_p2), %s201_s29, 2048, %s203_s6, %s191_s30, %s1979_s18, %s1979_s18, %s1978_s8  }
  0x36   : > { %214 = sbr.rel (%p1751_p8) target bundleno = 338 (0x152), region = 32  ;;  %s1818_s11 = sand.u32 (!%p1751_p8), 1, %s1652_s13  }
  0x37   : > { %s1147_s4 = sshll.u32 (!%p1751_p8), %s1818_s11, 7  ;;  %s217_s26 = scalar_lea.sflag (!%p1751_p8), [#allocation4], %s1818_s11 }
  0x38   : > { %s1824_s27 = scalar_lea.vmem (!%p1751_p8), [#allocation3], %s1147_s4  ;;  %p1980_p10 = scmp.ne.s32.totalorder (!%p1751_p8), %s1971_s22, 0 }
  0x3b   : > { %1635 = dma.done.wait (%p1980_p10), %s217_s26, 2048  }
  0x3c   : > { %1637 = vsyncadd (%p1980_p10), %s217_s26, 4294965248 }
  0x3d   : > { %1639 = dma.done.wait (%p1731_p1), [#allocation7], 1024  }
  0x3e   : > { %1641 = vsyncadd (%p1731_p1), [#allocation7], 4294966272  ;;  %v1506_v0 = vld [vmem:[#allocation6 + $0x38] sm:$0xff]   ;;  %v1507_v1 = vld [vmem:[#allocation6 + $0x30] sm:$0xff]   ;;  %s1867_s24 = scalar_lea.vmem [#allocation8], %s1147_s4  ;;  %s1245_s30 = sshll.u32 %s1660_s15, 11 }
  0x3f   : > { %1365 = vmatprep.subr.bf16.mxu0 %v1506_v0  ;;  %1413 = vmatprep.subr.bf16.mxu1 %v1506_v0  ;;  %v1508_v2 = vld [vmem:[#allocation6 + $0x28] sm:$0xff]   ;;  %v1509_v3 = vld [vmem:[#allocation6 + $0x20] sm:$0xff]   ;;  %v1510_v6 = vld [vmem:[#allocation6 + $0x18] sm:$0xff]   ;;  %s1023_s29 = sshll.u32 %s1867_s24, 4  ;;  %s1908_s21 = scalar_lea.hbm %s1965_s3, %s1245_s30  ;;  %s1910_s29 = int_to_ptr.vmem [resolvable:$true] %s1023_s29 }
  0x40   : > { %1366 = vmatpush3.bf16.msra.mxu0 %v1506_v0  ;;  %1421 = vmatpush3.bf16.msra.mxu1 %v1506_v0  ;;  %v1514_v4 = vld [vmem:[%s1824_s27] sm:$0xff]   ;;  %v1511_v7 = vld [vmem:[#allocation6 + $0x10] sm:$0xff]   ;;  %v1512_v8 = vld [vmem:[#allocation6 + $0x8] sm:$0xff]   ;;  %s1009_s15 = scalar_lea.sflag [#allocation5], %s1818_s11  ;;  %s1584_s10 = scalar_lea.vmem %s1910_s29, 2048 }
  0x41   : > { %1367 = vmatprep.subr.bf16.mxu0 %v1507_v1  ;;  %1414 = vmatprep.subr.bf16.mxu1 %v1507_v1  ;;  %v1515_v5 = vld [vmem:[%s1824_s27 + $0x40] sm:$0xff]   ;;  %v1516_v10 = vld [vmem:[%s1824_s27 + $0x8] sm:$0xff]   ;;  %v1518_v12 = vld [vmem:[%s1824_s27 + $0x10] sm:$0xff]   ;;  %p1585_p1 = scmp.ne.s32.totalorder %s1910_s29, %s1584_s10  ;;  %s1674_s7 = smov [#allocation8]  }
  0x42   : > { %1381 = vmatprep.mubr.bf16.mxu0 %v1514_v4  ;;  %1397 = vmatprep.mubr.bf16.mxu1 %v1515_v5  ;;  %v1513_v9 = vld [vmem:[#allocation6] sm:$0xff]   ;;  %v1517_v11 = vld [vmem:[%s1824_s27 + $0x48] sm:$0xff]   ;;  %v1519_v13 = vld [vmem:[%s1824_s27 + $0x50] sm:$0xff]   ;;  %s1588_s25 = sshll.u32 %s1674_s7, 4  ;;  %s1589_s25 = int_to_ptr.vmem [resolvable:$false] %s1588_s25 }
  0x43   : > { %v1520_v14 = vld [vmem:[%s1824_s27 + $0x18] sm:$0xff]   ;;  %v1522_v16 = vld [vmem:[%s1824_s27 + $0x20] sm:$0xff]   ;;  %v1524_v18 = vld [vmem:[%s1824_s27 + $0x28] sm:$0xff]   ;;  %p1586_p8 = pnand %p1585_p1, %p1787_p13  ;;  %s1590_s8 = scalar_lea.vmem %s1589_s25, 4096 }
  0x44   : > { %1368 = vmatpush3.bf16.msra.mxu0 %v1507_v1  ;;  %1422 = vmatpush3.bf16.msra.mxu1 %v1507_v1  ;;  %v1521_v15 = vld [vmem:[%s1824_s27 + $0x58] sm:$0xff]   ;;  %v1523_v17 = vld [vmem:[%s1824_s27 + $0x60] sm:$0xff]   ;;  %v1525_v19 = vld [vmem:[%s1824_s27 + $0x68] sm:$0xff]   ;;  %p1591_p0 = scmp.lt.s32.totalorder %s1910_s29, %s1589_s25  ;;  %p1592_p2 = scmp.lt.s32.totalorder %s1590_s8, %s1584_s10 }
  0x45   : > { %1369 = vmatprep.subr.bf16.mxu0 %v1508_v2  ;;  %1415 = vmatprep.subr.bf16.mxu1 %v1508_v2  ;;  %v1526_v20 = vld [vmem:[%s1824_s27 + $0x30] sm:$0xff]   ;;  %v1528_v22 = vld [vmem:[%s1824_s27 + $0x38] sm:$0xff]   ;;  %v1853_v24 = vld [vmem:[%s1964_s2] ss:$0 sm:$0xff]  ;;  %p1587_p12 = pneg %p1586_p8 }
  0x46   : > { %v1527_v21 = vld [vmem:[%s1824_s27 + $0x70] sm:$0xff]   ;;  %v1529_v23 = vld [vmem:[%s1824_s27 + $0x78] sm:$0xff]   ;;  %p1593_p3 = por %p1592_p2, %p1591_p0 }
  0x48   : > { %1370 = vmatpush3.bf16.msra.mxu0 %v1508_v2  ;;  %1423 = vmatpush3.bf16.msra.mxu1 %v1508_v2  ;;  %p1594_p5 = pnand %p1593_p3, %p1587_p12 }
  0x49   : > { %1371 = vmatprep.subr.bf16.mxu0 %v1509_v3  ;;  %1416 = vmatprep.subr.bf16.mxu1 %v1509_v3 }
  0x4c   : > { %1372 = vmatpush3.bf16.msra.mxu0 %v1509_v3  ;;  %1424 = vmatpush3.bf16.msra.mxu1 %v1509_v3 }
  0x4d   : > { %1373 = vmatprep.subr.bf16.mxu0 %v1510_v6  ;;  %1417 = vmatprep.subr.bf16.mxu1 %v1510_v6 }
  0x50   : > { %1374 = vmatpush3.bf16.msra.mxu0 %v1510_v6  ;;  %1425 = vmatpush3.bf16.msra.mxu1 %v1510_v6 }
  0x51   : > { %1375 = vmatprep.subr.bf16.mxu0 %v1511_v7  ;;  %1418 = vmatprep.subr.bf16.mxu1 %v1511_v7 }
  0x54   : > { %1376 = vmatpush3.bf16.msra.mxu0 %v1511_v7  ;;  %1426 = vmatpush3.bf16.msra.mxu1 %v1511_v7 }
  0x55   : > { %1377 = vmatprep.subr.bf16.mxu0 %v1512_v8  ;;  %1419 = vmatprep.subr.bf16.mxu1 %v1512_v8 }
  0x58   : > { %1378 = vmatpush3.bf16.msra.mxu0 %v1512_v8  ;;  %1427 = vmatpush3.bf16.msra.mxu1 %v1512_v8 }
  0x59   : > { %1379 = vmatprep.subr.bf16.mxu0 %v1513_v9  ;;  %1420 = vmatprep.subr.bf16.mxu1 %v1513_v9 }
  0x5c   : > { %1380 = vmatpush3.bf16.msra.mxu0 %v1513_v9  ;;  %1428 = vmatpush3.bf16.msra.mxu1 %v1513_v9 }
  0x5f   : > { %1382 = vmatmul.mubr.bf16.vlgmr.msra.gmra.mxu0 %v1516_v10  ;;  %1398 = vmatmul.mubr.bf16.vlgmr.msra.gmra.mxu1 %v1517_v11 }
  0x60   : > { %1385 = vmatprep.mubr.bf16.mxu0 %v1518_v12  ;;  %1401 = vmatprep.mubr.bf16.mxu1 %v1519_v13 }
  0x67   : > { %1386 = vmatmul.mubr.bf16.gmra.mxu0 %v1520_v14  ;;  %1402 = vmatmul.mubr.bf16.gmra.mxu1 %v1521_v15 }
  0x68   : > { %1389 = vmatprep.mubr.bf16.mxu0 %v1522_v16  ;;  %1405 = vmatprep.mubr.bf16.mxu1 %v1523_v17 }
  0x6f   : > { %1390 = vmatmul.mubr.bf16.gmra.mxu0 %v1524_v18  ;;  %1406 = vmatmul.mubr.bf16.gmra.mxu1 %v1525_v19 }
  0x70   : > { %1393 = vmatprep.mubr.bf16.mxu0 %v1526_v20  ;;  %1409 = vmatprep.mubr.bf16.mxu1 %v1527_v21 }
  0x77   : > { %1394 = vmatmul.mubr.bf16.gmra.mxu0 %v1528_v22  ;;  %1410 = vmatmul.mubr.bf16.gmra.mxu1 %v1529_v23 }
 0x11f   : > { %v1383_v25 = vpop.f32.mrf.mxu0  ;;  %v1399_v26 = vpop.f32.mrf.mxu1 }
 0x120   : > { %v786_v27 = vadd.f32 %v1383_v25, %v1853_v24  ;;  %v802_v28 = vadd.f32 %v1399_v26, %v1853_v24 }
 0x121   : > { %v551_v29 = vpop.f32.mrf.mxu0  ;;  %v615_v30 = vpop.f32.mrf.mxu1 }
 0x122   : > { %v784_v31 = vadd.f32 %v1853_v24, %v551_v29  ;;  %v800_v32 = vadd.f32 %v1853_v24, %v615_v30  ;;  %v818_v37 = vmax.f32 %v786_v27, 0.0  ;;  %v834_v38 = vmax.f32 %v802_v28, 0.0 }
 0x123   : > { %v1384_v33 = vpop.f32.mrf.mxu0  ;;  %v1400_v34 = vpop.f32.mrf.mxu1 }
 0x124   : > { %v787_v35 = vadd.f32 %v1384_v33, %v1853_v24  ;;  %v803_v36 = vadd.f32 %v1400_v34, %v1853_v24  ;;  %v816_v45 = vmax.f32 %v784_v31, 0.0  ;;  %v832_v46 = vmax.f32 %v800_v32, 0.0 }
 0x125   : > { %v554_v39 = vpop.f32.mrf.mxu0  ;;  %v618_v40 = vpop.f32.mrf.mxu1 }
 0x126   : > { %v819_v41 = vmax.f32 %v787_v35, 0.0  ;;  %v835_v42 = vmax.f32 %v803_v36, 0.0  ;;  %v785_v43 = vadd.f32 %v1853_v24, %v554_v39  ;;  %v801_v44 = vadd.f32 %v1853_v24, %v618_v40 }
 0x127   : > { %v1387_v47 = vpop.f32.mrf.mxu0  ;;  %v1403_v48 = vpop.f32.mrf.mxu1 }
 0x128   : > { %v1254_v49 = vpack.c.bf16 %v819_v41, %v818_v37  ;;  %v1294_v50 = vpack.c.bf16 %v835_v42, %v834_v38  ;;  %v817_v51 = vmax.f32 %v785_v43, 0.0  ;;  %v833_v52 = vmax.f32 %v801_v44, 0.0 }
 0x129   : > { %v790_v53 = vadd.f32 %v1387_v47, %v1853_v24  ;;  %v806_v54 = vadd.f32 %v1403_v48, %v1853_v24  ;;  %v567_v55 = vpop.f32.mrf.mxu0  ;;  %v631_v56 = vpop.f32.mrf.mxu1 }
 0x12a   : > { %1326 = vst [vmem:[%s1867_s24 + $0x8] sm:$0xff] %v1254_v49   ;;  %1334 = vst [vmem:[%s1867_s24 + $0x48] sm:$0xff] %v1294_v50   ;;  %v1249_v57 = vpack.c.bf16 %v817_v51, %v816_v45  ;;  %v1289_v58 = vpack.c.bf16 %v833_v52, %v832_v46  ;;  %v788_v59 = vadd.f32 %v1853_v24, %v567_v55 }
 0x12b   : > { %v804_v60 = vadd.f32 %v1853_v24, %v631_v56  ;;  %v1388_v61 = vpop.f32.mrf.mxu0  ;;  %v1404_v62 = vpop.f32.mrf.mxu1  ;;  %v822_v1 = vmax.f32 %v790_v53, 0.0  ;;  %v838_v2 = vmax.f32 %v806_v54, 0.0 }
 0x12c   : > { %1250 = vst [vmem:[%s1867_s24] sm:$0xff] %v1249_v57   ;;  %1333 = vst [vmem:[%s1867_s24 + $0x40] sm:$0xff] %v1289_v58   ;;  %v791_v63 = vadd.f32 %v1388_v61, %v1853_v24  ;;  %v807_v0 = vadd.f32 %v1404_v62, %v1853_v24  ;;  %v820_v9 = vmax.f32 %v788_v59, 0.0 }
 0x12d   : > { %v570_v3 = vpop.f32.mrf.mxu0  ;;  %v634_v4 = vpop.f32.mrf.mxu1  ;;  %v836_v10 = vmax.f32 %v804_v60, 0.0 }
 0x12e   : > { %v823_v5 = vmax.f32 %v791_v63, 0.0  ;;  %v839_v6 = vmax.f32 %v807_v0, 0.0  ;;  %v789_v7 = vadd.f32 %v1853_v24, %v570_v3  ;;  %v805_v8 = vadd.f32 %v1853_v24, %v634_v4 }
 0x12f   : > { %v1391_v11 = vpop.f32.mrf.mxu0  ;;  %v1407_v12 = vpop.f32.mrf.mxu1 }
 0x130   : > { %v1264_v13 = vpack.c.bf16 %v823_v5, %v822_v1  ;;  %v1304_v14 = vpack.c.bf16 %v839_v6, %v838_v2  ;;  %v821_v15 = vmax.f32 %v789_v7, 0.0  ;;  %v837_v16 = vmax.f32 %v805_v8, 0.0 }
 0x131   : > { %v794_v17 = vadd.f32 %v1391_v11, %v1853_v24  ;;  %v810_v18 = vadd.f32 %v1407_v12, %v1853_v24  ;;  %v583_v19 = vpop.f32.mrf.mxu0  ;;  %v647_v20 = vpop.f32.mrf.mxu1 }
 0x132   : > { %1328 = vst [vmem:[%s1867_s24 + $0x18] sm:$0xff] %v1264_v13   ;;  %1336 = vst [vmem:[%s1867_s24 + $0x58] sm:$0xff] %v1304_v14   ;;  %v1259_v21 = vpack.c.bf16 %v821_v15, %v820_v9  ;;  %v1299_v22 = vpack.c.bf16 %v837_v16, %v836_v10  ;;  %v792_v23 = vadd.f32 %v1853_v24, %v583_v19 }
 0x133   : > { %v808_v25 = vadd.f32 %v1853_v24, %v647_v20  ;;  %v1392_v26 = vpop.f32.mrf.mxu0  ;;  %v1408_v27 = vpop.f32.mrf.mxu1  ;;  %v826_v30 = vmax.f32 %v794_v17, 0.0  ;;  %v842_v31 = vmax.f32 %v810_v18, 0.0 }
 0x134   : > { %1327 = vst [vmem:[%s1867_s24 + $0x10] sm:$0xff] %v1259_v21   ;;  %1335 = vst [vmem:[%s1867_s24 + $0x50] sm:$0xff] %v1299_v22   ;;  %v795_v28 = vadd.f32 %v1392_v26, %v1853_v24  ;;  %v811_v29 = vadd.f32 %v1408_v27, %v1853_v24  ;;  %v824_v38 = vmax.f32 %v792_v23, 0.0 }
 0x135   : > { %v586_v32 = vpop.f32.mrf.mxu0  ;;  %v650_v33 = vpop.f32.mrf.mxu1  ;;  %v840_v39 = vmax.f32 %v808_v25, 0.0 }
 0x136   : > { %v827_v34 = vmax.f32 %v795_v28, 0.0  ;;  %v843_v35 = vmax.f32 %v811_v29, 0.0  ;;  %v793_v36 = vadd.f32 %v1853_v24, %v586_v32  ;;  %v809_v37 = vadd.f32 %v1853_v24, %v650_v33 }
 0x137   : > { %v1395_v40 = vpop.f32.mrf.mxu0  ;;  %v1411_v41 = vpop.f32.mrf.mxu1 }
 0x138   : > { %v1274_v42 = vpack.c.bf16 %v827_v34, %v826_v30  ;;  %v1314_v43 = vpack.c.bf16 %v843_v35, %v842_v31  ;;  %v825_v44 = vmax.f32 %v793_v36, 0.0  ;;  %v841_v45 = vmax.f32 %v809_v37, 0.0 }
 0x139   : > { %v798_v46 = vadd.f32 %v1395_v40, %v1853_v24  ;;  %v814_v47 = vadd.f32 %v1411_v41, %v1853_v24  ;;  %v599_v48 = vpop.f32.mrf.mxu0  ;;  %v663_v49 = vpop.f32.mrf.mxu1 }
 0x13a   : > { %1330 = vst [vmem:[%s1867_s24 + $0x28] sm:$0xff] %v1274_v42   ;;  %1338 = vst [vmem:[%s1867_s24 + $0x68] sm:$0xff] %v1314_v43   ;;  %v1269_v50 = vpack.c.bf16 %v825_v44, %v824_v38  ;;  %v1309_v51 = vpack.c.bf16 %v841_v45, %v840_v39  ;;  %v796_v52 = vadd.f32 %v1853_v24, %v599_v48 }
 0x13b   : > { %v812_v53 = vadd.f32 %v1853_v24, %v663_v49  ;;  %v1396_v54 = vpop.f32.mrf.mxu0  ;;  %v1412_v55 = vpop.f32.mrf.mxu1  ;;  %v830_v58 = vmax.f32 %v798_v46, 0.0  ;;  %v846_v59 = vmax.f32 %v814_v47, 0.0 }
 0x13c   : > { %1329 = vst [vmem:[%s1867_s24 + $0x20] sm:$0xff] %v1269_v50   ;;  %1337 = vst [vmem:[%s1867_s24 + $0x60] sm:$0xff] %v1309_v51   ;;  %v799_v56 = vadd.f32 %v1396_v54, %v1853_v24  ;;  %v815_v57 = vadd.f32 %v1412_v55, %v1853_v24  ;;  %v828_v2 = vmax.f32 %v796_v52, 0.0 }
 0x13d   : > { %v602_v60 = vpop.f32.mrf.mxu0  ;;  %v666_v61 = vpop.f32.mrf.mxu1  ;;  %v844_v3 = vmax.f32 %v812_v53, 0.0 }
 0x13e   : > { %v831_v62 = vmax.f32 %v799_v56, 0.0  ;;  %v847_v63 = vmax.f32 %v815_v57, 0.0  ;;  %v797_v0 = vadd.f32 %v1853_v24, %v602_v60  ;;  %v813_v1 = vadd.f32 %v1853_v24, %v666_v61 }
 0x140   : > { %v1284_v4 = vpack.c.bf16 %v831_v62, %v830_v58  ;;  %v1324_v5 = vpack.c.bf16 %v847_v63, %v846_v59  ;;  %v829_v6 = vmax.f32 %v797_v0, 0.0  ;;  %v845_v7 = vmax.f32 %v813_v1, 0.0 }
 0x142   : > { %1332 = vst [vmem:[%s1867_s24 + $0x38] sm:$0xff] %v1284_v4   ;;  %1340 = vst [vmem:[%s1867_s24 + $0x78] sm:$0xff] %v1324_v5   ;;  %v1279_v24 = vpack.c.bf16 %v829_v6, %v828_v2  ;;  %v1319_v8 = vpack.c.bf16 %v845_v7, %v844_v3 }
 0x144   : > { %1331 = vst [vmem:[%s1867_s24 + $0x30] sm:$0xff] %v1279_v24   ;;  %1339 = vst [vmem:[%s1867_s24 + $0x70] sm:$0xff] %v1319_v8  }
 0x145   : > { %1597 = shalt.err (!%p1594_p5)
}
 0x146   : > { %s1598_s18 = scalar_lea.hbm %s1908_s21, 2048  ;;  %s1602_s27 = scalar_lea.hbm %s1965_s3, 4096 }
 0x147   : > { %p1599_p7 = scmp.ne.s32.totalorder %s1908_s21, %s1598_s18  ;;  %p1603_p9 = scmp.lt.s32.totalorder %s1908_s21, %s1965_s3 }
 0x148   : > { %p1604_p11 = scmp.lt.s32.totalorder %s1602_s27, %s1598_s18 }
 0x149   : > { %p1600_p4 = pnand %p1599_p7, %p1787_p13 }
 0x14a   : > { %p1605_p10 = por %p1604_p11, %p1603_p9 }
 0x14b   : > { %p1601_p6 = pneg %p1600_p4 }
 0x14d   : > { %p1606_p1 = pnand %p1605_p10, %p1601_p6 }
 0x14f   : > { %1609 = shalt.err (!%p1606_p1)
}
 0x150   : > { %s1675_s24 = smov 64   ;;  %s1676_s30 = smov 4  }
 0x151   : > { %1435 = dma.vmem_to_hbm [thread:$0]  (%p1787_p13), %s1910_s29, 2048, %s1908_s21, %s1009_s15, %s1675_s24, %s1675_s24, %s1676_s30  }
 0x152 PF: > { %s1038_s5 = sand.u32 1, %s1648_s12   ;;  %p1981_p8 = scmp.ne.s32.totalorder %s1972_s23, 0 }
 0x153   : > { %p1982_p12 = scmp.ge.s32.totalorder %s1668_s17, 2  ;;  %s1039_s6 = scalar_lea.sflag [#allocation5], %s1038_s5 }
 0x155   : > { %p1446_p0 = pnand %p1982_p12, %p1981_p8 }
 0x157   : > { %p1447_p2 = pneg %p1446_p0 }
 0x159   : > { %1643 = dma.done.wait (%p1447_p2), %s1039_s6, 2048  }
 0x15a   : > { %1645 = vsyncadd (%p1447_p2), %s1039_s6, 4294965248  ;;  %s20_s17 = sadd.s32 1, %s1668_s17   ;;  %s1983_s12 = smov %s1652_s13 }
 0x15b   : > { %p17_p3 = scmp.ge.s32.totalorder %s20_s17, 4   ;;  %s1984_s13 = smov %s1656_s14 }
 0x15c   : > { %s1985_s14 = smov %s1796_s19  ;;  %s1986_s15 = smov %s1664_s16 }
 0x15d   : > { %s1987_s16 = smov %s1989_s28  ;;  %19 = sbr.rel (!%p17_p3) target bundleno = 7 (0x7), region = 93 }
 0x162   :  { %1044 = vsyncpa [#allocation4], 1 }
 0x163   :  { %1046 = vsyncpa [#allocation4 + $0x1], 1 }
 0x164   :  { %1047 = vsyncpa [#allocation7], 1 }
 0x165   :  { %1048 = vsyncpa [#allocation5], 1 }
 0x166   :  { %1050 = vsyncpa [#allocation5 + $0x1], 1 }

</bundles_post_ra>
